<compile_context>
chip_gen: v7x
topology: tpu7x:2x2x1
jax: 0.10.0
libtpu: 0.0.40
codegen_flags: <defaults>
</compile_context>

<pallas_src>
import jax
import jax.numpy as jnp
from jax.experimental import pallas as pl
from jax.experimental.pallas import tpu as pltpu

MULTIRES = 4                      # get_encoder('frequency_torch', multires=4)
ENC_DIM = 3 * (1 + 2 * MULTIRES)  # 27 : [x, sin(2^j x), cos(2^j x)] j=0..3
HIDDEN_BG = 16                    # hidden_dim_bg
NUM_LAYERS_BG = 2                 # num_layers_bg


def _round_up(x, m):
    return (x + m - 1) // m * m


# ---------------------------------------------------------------------------
# Kernel: background MLP + alpha compositing (fused), channel-planar layout.
#   inputs : rays_d/rgb/normal (3, TN), alpha (1, TN)   [pixels on lanes]
#   weights: w1t (16, 27), b1 (16, 1), w2t (3, 16), b2 (3, 1)   [resident]
#   outputs: image (3, TN), normal (3, TN)
# ---------------------------------------------------------------------------
def bg_composite_kernel(rays_d_ref, rgb_ref, nrm_ref, alpha_ref,
                        w1_ref, b1_ref, w2_ref, b2_ref,
                        img_ref, nrm_out_ref):
    d = rays_d_ref[...]                                     # (3, TN) f32
    # dirs = rays_d / ||rays_d||  (rsqrt; tiny eps guards zero-length rays/pad)
    inv_norm = jax.lax.rsqrt(jnp.sum(d * d, axis=0, keepdims=True) + 1e-20)
    d = d * inv_norm

    # frequency encoder: [x, sin(2^j x), cos(2^j x)] j=0..MULTIRES-1.
    # Only the base-frequency sin/cos hit the EUP; higher octaves use
    # double-angle recurrences on the VPU: sin 2x = 2 s c, cos 2x = 2 c^2 - 1.
    s = jnp.sin(d)
    c = jnp.cos(d)
    feats = [d, s, c]
    for _ in range(MULTIRES - 1):
        s, c = 2.0 * s * c, 2.0 * c * c - 1.0
        feats.append(s)
        feats.append(c)
    enc = jnp.concatenate(feats, axis=0)                    # (27, TN) sublanes

    # MLP(27, 3, 16, 2): Linear -> ReLU -> Linear, pixels on lanes.
    h = jnp.dot(w1_ref[...], enc,
                preferred_element_type=jnp.float32) + b1_ref[...]   # (16, TN)
    h = jnp.maximum(h, 0.0)
    o = jnp.dot(w2_ref[...], h,
                preferred_element_type=jnp.float32) + b2_ref[...]   # (3, TN)
    bg = jax.nn.sigmoid(o)

    a = alpha_ref[...]                                      # (1, TN)
    blend = (1.0 - a) * bg                                  # reused twice
    img_ref[...] = rgb_ref[...] * a + blend
    nrm_out_ref[...] = nrm_ref[...] * a + blend


def bg_and_composite(rays_d, rgb, normal, alpha, w1, b1, w2, b2,
                     *, tn=8192, min_blocks=8):
    """rays_d/rgb/normal: (B,H,W,3) f32; alpha: (B,H,W,1) f32.

    Returns (image, normal) composited over the background-MLP color."""
    B, H, W, _ = rays_d.shape
    N = B * H * W

    # channel-planar, lane-dense layout (layout plumbing in the wrapper).
    rays_p = rays_d.reshape(N, 3).T.astype(jnp.float32)     # (3, N)
    rgb_p = rgb.reshape(N, 3).T.astype(jnp.float32)
    nrm_p = normal.reshape(N, 3).T.astype(jnp.float32)
    alpha_p = alpha.reshape(N, 1).T.astype(jnp.float32)     # (1, N)

    # Pick the lane tile: as large as reasonable (HBM-bound kernel), but keep
    # several grid blocks so v7x's two TensorCores both get work.
    n128 = _round_up(N, 128)
    tn_eff = min(tn, n128)
    if n128 // tn_eff < min_blocks:
        tn_eff = max(128, (n128 // min_blocks) // 128 * 128)
    n_pad = _round_up(N, tn_eff)
    if n_pad != N:
        pad = ((0, 0), (0, n_pad - N))
        rays_p = jnp.pad(rays_p, pad)
        rgb_p = jnp.pad(rgb_p, pad)
        nrm_p = jnp.pad(nrm_p, pad)
        alpha_p = jnp.pad(alpha_p, pad)

    # Weights in "pixels on lanes" orientation; biases as (C, 1) columns.
    w1t = w1.T.astype(jnp.float32)                          # (16, 27)
    b1c = b1.reshape(HIDDEN_BG, 1).astype(jnp.float32)
    w2t = w2.T.astype(jnp.float32)                          # (3, 16)
    b2c = b2.reshape(3, 1).astype(jnp.float32)

    row3 = pl.BlockSpec((3, tn_eff), lambda i: (0, i))
    row1 = pl.BlockSpec((1, tn_eff), lambda i: (0, i))
    resident = lambda shape: pl.BlockSpec(shape, lambda i: (0, 0))

    img_p, nrm_out_p = pl.pallas_call(
        bg_composite_kernel,
        out_shape=(jax.ShapeDtypeStruct((3, n_pad), jnp.float32),
                   jax.ShapeDtypeStruct((3, n_pad), jnp.float32)),
        grid_spec=pltpu.PrefetchScalarGridSpec(
            num_scalar_prefetch=0,
            grid=(n_pad // tn_eff,),
            in_specs=[row3, row3, row3, row1,
                      resident((HIDDEN_BG, ENC_DIM)), resident((HIDDEN_BG, 1)),
                      resident((3, HIDDEN_BG)), resident((3, 1))],
            out_specs=[row3, row3],
        ),
        compiler_params=pltpu.CompilerParams(
            dimension_semantics=("parallel",)),
    )(rays_p, rgb_p, nrm_p, alpha_p, w1t, b1c, w2t, b2c)

    image = img_p[:, :N].T.reshape(B, H, W, 3)
    normal_out = nrm_out_p[:, :N].T.reshape(B, H, W, 3)
    return image, normal_out


# ---------------------------------------------------------------------------
# SMPL-X landmark projection: ~68x4 matmul per batch — far too small for a
# pallas_call (launch + masked-tile overhead dominates); plain JAX.
# ---------------------------------------------------------------------------
def project_landmarks(landmarks, mvp):
    """landmarks: (L,3); mvp: (B,4,4) -> (B,L,2)."""
    L = landmarks.shape[0]
    lm_h = jnp.concatenate(
        [landmarks, jnp.ones((L, 1), landmarks.dtype)], axis=-1)
    proj = jnp.einsum('ld,bkd->blk', lm_h, mvp)             # bmm with mvp^T
    return proj[..., :2] / proj[..., 2:3] * 0.5 + 0.5


def dlmesh_forward(rays_d, rgb, normal, alpha, landmarks, mvp, w1, b1, w2, b2):
    """Dense-math part of DLMesh.forward. Returns the same keys as the module
    (minus the mesh losses, which depend on untranslatable components)."""
    image, normal_out = bg_and_composite(
        rays_d, rgb, normal, alpha, w1, b1, w2, b2)
    smplx_landmarks = project_landmarks(landmarks, mvp)
    return {'image': image, 'alpha': alpha, 'normal': normal_out,
            'smplx_landmarks': smplx_landmarks}


# ---------------------------------------------------------------------------
# Plain-JAX reference (direct sin/cos, no recurrences) for sanity checking.
# ---------------------------------------------------------------------------
def reference_forward(rays_d, rgb, normal, alpha, landmarks, mvp, w1, b1, w2, b2):
    B, H, W, _ = rays_d.shape
    d = rays_d.reshape(-1, 3)
    d = d / jnp.linalg.norm(d, axis=-1, keepdims=True)
    feats = [d]
    for j in range(MULTIRES):
        f = d * (2.0 ** j)
        feats += [jnp.sin(f), jnp.cos(f)]
    enc = jnp.concatenate(feats, axis=-1)
    h = jnp.maximum(enc @ w1 + b1, 0.0)
    bg = jax.nn.sigmoid(h @ w2 + b2).reshape(B, H, W, 3)
    img = rgb * alpha + (1.0 - alpha) * bg
    nrm = normal * alpha + (1.0 - alpha) * bg
    lm_h = jnp.concatenate([landmarks, jnp.ones((landmarks.shape[0], 1))], -1)
    proj = jnp.einsum('ld,bkd->blk', lm_h, mvp)
    uv = proj[..., :2] / proj[..., 2:3] * 0.5 + 0.5
    return img, nrm, uv


# TODO(synk): SMPL-X body model, differentiable rasterizer (Renderer), mediapipe
# face landmarker, and torch_scatter-based lap_loss / normal_loss (data-dependent
# scatter over mesh connectivity) have no clean Pallas equivalent and are omitted.

if __name__ == "__main__":
    key = jax.random.PRNGKey(0)
    k = jax.random.split(key, 10)

    B, H, W = 2, 16, 16
    L = 68  # number of SMPL-X face landmarks

    # Synthetic inputs (renderer / body-model outputs stand-ins).
    rays_d = jax.random.normal(k[0], (B, H, W, 3), jnp.float32)
    rgb = jax.random.uniform(k[1], (B, H, W, 3), jnp.float32)
    normal = jax.random.uniform(k[2], (B, H, W, 3), jnp.float32)
    alpha = jax.random.uniform(k[3], (B, H, W, 1), jnp.float32)
    landmarks = jax.random.normal(k[4], (L, 3), jnp.float32)
    mvp = jax.random.normal(k[5], (B, 4, 4), jnp.float32) + \
        jnp.broadcast_to(jnp.eye(4, dtype=jnp.float32), (B, 4, 4))

    # Deterministic bg_net parameters (MLP(27, 3, 16, 2), bias=True).
    w1 = jax.random.uniform(k[6], (ENC_DIM, HIDDEN_BG), jnp.float32,
                            -1.0 / ENC_DIM ** 0.5, 1.0 / ENC_DIM ** 0.5)
    b1 = jax.random.uniform(k[7], (HIDDEN_BG,), jnp.float32,
                            -1.0 / ENC_DIM ** 0.5, 1.0 / ENC_DIM ** 0.5)
    w2 = jax.random.uniform(k[8], (HIDDEN_BG, 3), jnp.float32,
                            -1.0 / HIDDEN_BG ** 0.5, 1.0 / HIDDEN_BG ** 0.5)
    b2 = jax.random.uniform(k[9], (3,), jnp.float32,
                            -1.0 / HIDDEN_BG ** 0.5, 1.0 / HIDDEN_BG ** 0.5)

    out = dlmesh_forward(rays_d, rgb, normal, alpha, landmarks, mvp,
                         w1, b1, w2, b2)
    jax.block_until_ready(out)

    ref_img, ref_nrm, ref_uv = reference_forward(
        rays_d, rgb, normal, alpha, landmarks, mvp, w1, b1, w2, b2)
    assert jnp.allclose(out['image'], ref_img, atol=1e-2), "image mismatch"
    assert jnp.allclose(out['normal'], ref_nrm, atol=1e-2), "normal mismatch"
    assert jnp.allclose(out['smplx_landmarks'], ref_uv, atol=1e-2), \
        "landmark mismatch"

    print("KERNEL_OK")
</pallas_src>

<mosaic_0001>
module attributes {stable_mosaic.version = 11 : i64} {
  func.func @bg_composite_kernel(%arg0: i32, %arg1: memref<3x128xf32, #tpu.memory_space<vmem>>, %arg2: memref<3x128xf32, #tpu.memory_space<vmem>>, %arg3: memref<3x128xf32, #tpu.memory_space<vmem>>, %arg4: memref<1x128xf32, #tpu.memory_space<vmem>>, %arg5: memref<16x27xf32, #tpu.memory_space<vmem>>, %arg6: memref<16x1xf32, #tpu.memory_space<vmem>>, %arg7: memref<3x16xf32, #tpu.memory_space<vmem>>, %arg8: memref<3x1xf32, #tpu.memory_space<vmem>>, %arg9: memref<3x128xf32, #tpu.memory_space<vmem>>, %arg10: memref<3x128xf32, #tpu.memory_space<vmem>>) attributes {dimension_semantics = [#tpu.dimension_semantics<parallel>], iteration_bounds = array<i64: 4>, scalar_prefetch = 0 : i64, scratch_operands = 0 : i64, tpu.core_type = #tpu.core_type<tc>, window_params = [{transform_indices = @transform_0, window_bounds = array<i64: 3, 128>}, {transform_indices = @transform_1, window_bounds = array<i64: 3, 128>}, {transform_indices = @transform_2, window_bounds = array<i64: 3, 128>}, {transform_indices = @transform_3, window_bounds = array<i64: 1, 128>}, {pipeline_mode = #tpu.pipeline_mode<synchronous>, transform_indices = @transform_4, window_bounds = array<i64: 16, 27>}, {pipeline_mode = #tpu.pipeline_mode<synchronous>, transform_indices = @transform_5, window_bounds = array<i64: 16, 1>}, {pipeline_mode = #tpu.pipeline_mode<synchronous>, transform_indices = @transform_6, window_bounds = array<i64: 3, 16>}, {pipeline_mode = #tpu.pipeline_mode<synchronous>, transform_indices = @transform_7, window_bounds = array<i64: 3, 1>}, {transform_indices = @transform_8, window_bounds = array<i64: 3, 128>}, {transform_indices = @transform_9, window_bounds = array<i64: 3, 128>}]} {
    %c0 = arith.constant 0 : index
    %c0_0 = arith.constant 0 : index
    %0 = vector.load %arg1[%c0, %c0_0] : memref<3x128xf32, #tpu.memory_space<vmem>>, vector<3x128xf32>
    %1 = arith.mulf %0, %0 : vector<3x128xf32>
    %cst = arith.constant dense<0.000000e+00> : vector<128xf32>
    %2 = vector.multi_reduction <add>, %1, %cst [0] : vector<3x128xf32> to vector<128xf32>
    %3 = vector.shape_cast %2 : vector<128xf32> to vector<1x128xf32>
    %cst_1 = arith.constant 9.99999968E-21 : f32
    %4 = vector.broadcast %cst_1 : f32 to vector<1x128xf32>
    %5 = arith.addf %3, %4 : vector<1x128xf32>
    %6 = math.rsqrt %5 : vector<1x128xf32>
    %7 = vector.broadcast %6 : vector<1x128xf32> to vector<3x128xf32>
    %8 = arith.mulf %0, %7 : vector<3x128xf32>
    %9 = math.sin %8 : vector<3x128xf32>
    %10 = math.cos %8 : vector<3x128xf32>
    %cst_2 = arith.constant 2.000000e+00 : f32
    %11 = vector.broadcast %cst_2 : f32 to vector<3x128xf32>
    %12 = arith.mulf %11, %9 : vector<3x128xf32>
    %13 = arith.mulf %12, %10 : vector<3x128xf32>
    %cst_3 = arith.constant 2.000000e+00 : f32
    %14 = vector.broadcast %cst_3 : f32 to vector<3x128xf32>
    %15 = arith.mulf %14, %10 : vector<3x128xf32>
    %16 = arith.mulf %15, %10 : vector<3x128xf32>
    %cst_4 = arith.constant 1.000000e+00 : f32
    %17 = vector.broadcast %cst_4 : f32 to vector<3x128xf32>
    %18 = arith.subf %16, %17 : vector<3x128xf32>
    %cst_5 = arith.constant 2.000000e+00 : f32
    %19 = vector.broadcast %cst_5 : f32 to vector<3x128xf32>
    %20 = arith.mulf %19, %13 : vector<3x128xf32>
    %21 = arith.mulf %20, %18 : vector<3x128xf32>
    %cst_6 = arith.constant 2.000000e+00 : f32
    %22 = vector.broadcast %cst_6 : f32 to vector<3x128xf32>
    %23 = arith.mulf %22, %18 : vector<3x128xf32>
    %24 = arith.mulf %23, %18 : vector<3x128xf32>
    %cst_7 = arith.constant 1.000000e+00 : f32
    %25 = vector.broadcast %cst_7 : f32 to vector<3x128xf32>
    %26 = arith.subf %24, %25 : vector<3x128xf32>
    %cst_8 = arith.constant 2.000000e+00 : f32
    %27 = vector.broadcast %cst_8 : f32 to vector<3x128xf32>
    %28 = arith.mulf %27, %21 : vector<3x128xf32>
    %29 = arith.mulf %28, %26 : vector<3x128xf32>
    %cst_9 = arith.constant 2.000000e+00 : f32
    %30 = vector.broadcast %cst_9 : f32 to vector<3x128xf32>
    %31 = arith.mulf %30, %26 : vector<3x128xf32>
    %32 = arith.mulf %31, %26 : vector<3x128xf32>
    %cst_10 = arith.constant 1.000000e+00 : f32
    %33 = vector.broadcast %cst_10 : f32 to vector<3x128xf32>
    %34 = arith.subf %32, %33 : vector<3x128xf32>
    %35 = tpu.concatenate %8, %9, %10, %13, %18, %21, %26, %29, %34 in 0 : vector<3x128xf32>, vector<3x128xf32>, vector<3x128xf32>, vector<3x128xf32>, vector<3x128xf32>, vector<3x128xf32>, vector<3x128xf32>, vector<3x128xf32>, vector<3x128xf32> -> vector<27x128xf32>
    %c0_11 = arith.constant 0 : index
    %c0_12 = arith.constant 0 : index
    %36 = vector.load %arg5[%c0_11, %c0_12] : memref<16x27xf32, #tpu.memory_space<vmem>>, vector<16x27xf32>
    %cst_13 = arith.constant dense<0.000000e+00> : vector<16x128xf32>
    %37 = tpu.matmul %36, %35, %cst_13 {dimension_numbers = #tpu.dot_dimension_numbers<[1], [0], [0], [1], [0, 0, 1, 1], [], []>} : vector<16x27xf32>, vector<27x128xf32>, vector<16x128xf32> -> vector<16x128xf32>
    %c0_14 = arith.constant 0 : index
    %c0_15 = arith.constant 0 : index
    %38 = vector.load %arg6[%c0_14, %c0_15] : memref<16x1xf32, #tpu.memory_space<vmem>>, vector<16x1xf32>
    %39 = vector.broadcast %38 : vector<16x1xf32> to vector<16x128xf32>
    %40 = arith.addf %37, %39 : vector<16x128xf32>
    %cst_16 = arith.constant 0.000000e+00 : f32
    %41 = vector.broadcast %cst_16 : f32 to vector<16x128xf32>
    %42 = arith.maximumf %40, %41 : vector<16x128xf32>
    %c0_17 = arith.constant 0 : index
    %c0_18 = arith.constant 0 : index
    %43 = vector.load %arg7[%c0_17, %c0_18] : memref<3x16xf32, #tpu.memory_space<vmem>>, vector<3x16xf32>
    %cst_19 = arith.constant dense<0.000000e+00> : vector<3x128xf32>
    %44 = tpu.matmul %43, %42, %cst_19 {dimension_numbers = #tpu.dot_dimension_numbers<[1], [0], [0], [1], [0, 0, 1, 1], [], []>} : vector<3x16xf32>, vector<16x128xf32>, vector<3x128xf32> -> vector<3x128xf32>
    %c0_20 = arith.constant 0 : index
    %c0_21 = arith.constant 0 : index
    %45 = vector.load %arg8[%c0_20, %c0_21] : memref<3x1xf32, #tpu.memory_space<vmem>>, vector<3x1xf32>
    %46 = vector.broadcast %45 : vector<3x1xf32> to vector<3x128xf32>
    %47 = arith.addf %44, %46 : vector<3x128xf32>
    %48 = arith.negf %47 : vector<3x128xf32>
    %49 = math.exp %48 : vector<3x128xf32>
    %cst_22 = arith.constant 1.000000e+00 : f32
    %50 = vector.broadcast %cst_22 : f32 to vector<3x128xf32>
    %51 = arith.addf %50, %49 : vector<3x128xf32>
    %52 = arith.divf %50, %51 : vector<3x128xf32>
    %c0_23 = arith.constant 0 : index
    %c0_24 = arith.constant 0 : index
    %53 = vector.load %arg4[%c0_23, %c0_24] : memref<1x128xf32, #tpu.memory_space<vmem>>, vector<1x128xf32>
    %cst_25 = arith.constant 1.000000e+00 : f32
    %54 = vector.broadcast %cst_25 : f32 to vector<1x128xf32>
    %55 = arith.subf %54, %53 : vector<1x128xf32>
    %56 = vector.broadcast %55 : vector<1x128xf32> to vector<3x128xf32>
    %57 = arith.mulf %56, %52 : vector<3x128xf32>
    %c0_26 = arith.constant 0 : index
    %c0_27 = arith.constant 0 : index
    %58 = vector.load %arg2[%c0_26, %c0_27] : memref<3x128xf32, #tpu.memory_space<vmem>>, vector<3x128xf32>
    %59 = vector.broadcast %53 : vector<1x128xf32> to vector<3x128xf32>
    %60 = arith.mulf %58, %59 : vector<3x128xf32>
    %61 = arith.addf %60, %57 : vector<3x128xf32>
    %c0_28 = arith.constant 0 : index
    %c0_29 = arith.constant 0 : index
    %62 = vector.load %arg9[%c0_28, %c0_29] : memref<3x128xf32, #tpu.memory_space<vmem>>, vector<3x128xf32>
    tpu.vector_store %arg9[%c0_28, %c0_29], %61 {strides = array<i32>} : memref<3x128xf32, #tpu.memory_space<vmem>>, vector<3x128xf32>,
    %c0_30 = arith.constant 0 : index
    %c0_31 = arith.constant 0 : index
    %63 = vector.load %arg3[%c0_30, %c0_31] : memref<3x128xf32, #tpu.memory_space<vmem>>, vector<3x128xf32>
    %64 = vector.broadcast %53 : vector<1x128xf32> to vector<3x128xf32>
    %65 = arith.mulf %63, %64 : vector<3x128xf32>
    %66 = arith.addf %65, %57 : vector<3x128xf32>
    %c0_32 = arith.constant 0 : index
    %c0_33 = arith.constant 0 : index
    %67 = vector.load %arg10[%c0_32, %c0_33] : memref<3x128xf32, #tpu.memory_space<vmem>>, vector<3x128xf32>
    tpu.vector_store %arg10[%c0_32, %c0_33], %66 {strides = array<i32>} : memref<3x128xf32, #tpu.memory_space<vmem>>, vector<3x128xf32>,
    return
  }
  func.func @transform_0(%arg0: i32) -> (i32, i32) {
    %c0_i32 = arith.constant 0 : i32
    %c0_i32_0 = arith.constant 0 : i32
    return %c0_i32, %arg0 : i32, i32
  }
  func.func @transform_1(%arg0: i32) -> (i32, i32) {
    %c0_i32 = arith.constant 0 : i32
    %c0_i32_0 = arith.constant 0 : i32
    return %c0_i32, %arg0 : i32, i32
  }
  func.func @transform_2(%arg0: i32) -> (i32, i32) {
    %c0_i32 = arith.constant 0 : i32
    %c0_i32_0 = arith.constant 0 : i32
    return %c0_i32, %arg0 : i32, i32
  }
  func.func @transform_3(%arg0: i32) -> (i32, i32) {
    %c0_i32 = arith.constant 0 : i32
    %c0_i32_0 = arith.constant 0 : i32
    return %c0_i32, %arg0 : i32, i32
  }
  func.func @transform_4(%arg0: i32) -> (i32, i32) {
    %c0_i32 = arith.constant 0 : i32
    %c0_i32_0 = arith.constant 0 : i32
    %c0_i32_1 = arith.constant 0 : i32
    return %c0_i32, %c0_i32_0 : i32, i32
  }
  func.func @transform_5(%arg0: i32) -> (i32, i32) {
    %c0_i32 = arith.constant 0 : i32
    %c0_i32_0 = arith.constant 0 : i32
    %c0_i32_1 = arith.constant 0 : i32
    return %c0_i32, %c0_i32_0 : i32, i32
  }
  func.func @transform_6(%arg0: i32) -> (i32, i32) {
    %c0_i32 = arith.constant 0 : i32
    %c0_i32_0 = arith.constant 0 : i32
    %c0_i32_1 = arith.constant 0 : i32
    return %c0_i32, %c0_i32_0 : i32, i32
  }
  func.func @transform_7(%arg0: i32) -> (i32, i32) {
    %c0_i32 = arith.constant 0 : i32
    %c0_i32_0 = arith.constant 0 : i32
    %c0_i32_1 = arith.constant 0 : i32
    return %c0_i32, %c0_i32_0 : i32, i32
  }
  func.func @transform_8(%arg0: i32) -> (i32, i32) {
    %c0_i32 = arith.constant 0 : i32
    %c0_i32_0 = arith.constant 0 : i32
    return %c0_i32, %arg0 : i32, i32
  }
  func.func @transform_9(%arg0: i32) -> (i32, i32) {
    %c0_i32 = arith.constant 0 : i32
    %c0_i32_0 = arith.constant 0 : i32
    return %c0_i32, %arg0 : i32, i32
  }
}

</mosaic_0001>

<bundles_post_ra>
// kernel: tpu_custom_call.1
= control target key start
LH: loop header
LB: loop body
LE: loop exit
PB: predicated region body
PF: predicated region fallthrough
CT: control target
= control target key end

     0   :  { %s1844_s0 = inlined_call_operand.vmem [shape: f32[3,512], index: 0, kind: input, shape index: {}]   ;;  %s1845_s1 = inlined_call_operand.hbm [shape: f32[3,512], index: 1, kind: input, shape index: {}]   ;;  %s1846_s2 = inlined_call_operand.hbm [shape: f32[3,512], index: 2, kind: input, shape index: {}]   ;;  %s1847_s3 = inlined_call_operand.hbm [shape: f32[1,512], index: 3, kind: input, shape index: {}]   ;;  %s1848_s4 = inlined_call_operand.vmem [shape: f32[16,27], index: 4, kind: input, shape index: {}]   ;;  %s1849_s5 = inlined_call_operand.vmem [shape: f32[16,1], index: 5, kind: input, shape index: {}]   ;;  %s1850_s6 = inlined_call_operand.vmem [shape: f32[3,16], index: 6, kind: input, shape index: {}]   ;;  %s1851_s7 = inlined_call_operand.vmem [shape: f32[3,1], index: 7, kind: input, shape index: {}]   ;;  %s1852_s8 = inlined_call_operand.hbm [shape: f32[3,512], index: 8, kind: output, shape index: {0}]   ;;  %s1853_s9 = inlined_call_operand.hbm [shape: f32[3,512], index: 9, kind: output, shape index: {1}]  }
   0x1   :  { %1867 = sst [smem:[#allocation20_spill]] %s1845_s1 }
   0x2   :  { %1868 = sst [smem:[#allocation21_spill]] %s1846_s2 }
   0x3   :  { %1869 = sst [smem:[#allocation22_spill]] %s1852_s8 }
   0x4   :  { %1870 = sst [smem:[#allocation23_spill]] %s1853_s9 }
   0x5   :  { %15 = vsyncpa [#allocation3], 0 }
   0x6   :  { %17 = vsyncpa [#allocation3 + $0x1], 0 }
   0x7   :  { %18 = vsyncpa [#allocation6], 0 }
   0x8   :  { %20 = vsyncpa [#allocation6 + $0x1], 0 }
   0x9   :  { %21 = vsyncpa [#allocation4], 0 }
   0xa   :  { %23 = vsyncpa [#allocation4 + $0x1], 0 }
   0xb   :  { %24 = vsyncpa [#allocation10], 0 }
   0xc   :  { %26 = vsyncpa [#allocation10 + $0x1], 0  ;;  %s1534_s30 = smov 0   ;;  %s1536_s10 = smov 0  }
   0xd   :  { %s1538_s11 = smov 0   ;;  %s1540_s12 = smov 0  }
   0xe LB: > { %1871 = sst [smem:[#allocation15_spill]] %s1454_s30  ;;  %s1555_s13 = sadd.s32 4294967295, %s1466_s12   ;;  %s1466_s12 = sphi %s1540_s12, %s1897_s12   ;;  %s1462_s11 = sphi %s1538_s11, %s1899_s11   ;;  %s1458_s10 = sphi %s1536_s10, %s1901_s10   ;;  %s1454_s30 = sphi %s1534_s30, %s1900_s30  }
   0xf   : > { %1872 = sst [smem:[#allocation16_spill]] %s1462_s11  ;;  %s1110_s14 = sadd.s32 4294967294, %s1466_s12  }
  0x10   : > { %s1559_s15 = sadd.s32 1, %s1466_s12   ;;  %s65_s16 = sadd.s32 1, %s1462_s11 }
  0x11   : > { %1873 = sst [smem:[#allocation17_spill]] %s1559_s15  ;;  %s62_s17 = ssub.s32 %s1466_s12, %s1559_s15 }
  0x12   : > { %p72_p0 = scmp.ne.s32.totalorder %s1462_s11, %s1458_s10  ;;  %p63_p1 = scmp.eq.s32.totalorder %s62_s17, 0 }
  0x13   : > { %p73_p2 = scmp.eq.s32.totalorder %s1466_s12, 0  ;;  %p78_p3 = scmp.ne.s32.totalorder %s1458_s10, %s1454_s30 }
  0x14   : > { %p79_p4 = scmp.eq.s32.totalorder %s1555_s13, 0  ;;  %p238_p7 = scmp.eq.s32.totalorder %s1555_s13, 3 }
  0x15   : > { %s1571_s18 = scalar_select %p63_p1, %s1462_s11, %s65_s16  }
  0x16   : > { %p74_p5 = por %p73_p2, %p72_p0  ;;  %p1573_p6 = por %p79_p4, %p78_p3 }
  0x17   : > { %1874 = sst [smem:[#allocation18_spill]] %s1571_s18  ;;  %p244_p8 = scmp.eq.s32.totalorder %s1110_s14, 3 }
  0x18   : > { %s1875_s19 = scalar_select %p1573_p6, 1, 0 }
  0x19   : > { %p1217_p9 = scmp.lt.s32.totalorder %s1466_s12, 4  ;;  %p1579_p10 = por %p238_p7, %p72_p0 }
  0x1a   : > { %p1583_p11 = por %p244_p8, %p78_p3  ;;  %s1588_s22 = sand.u32 1, %s1462_s11  }
  0x1b   : > { %s1876_s20 = scalar_select %p1579_p10, 1, 0 }
  0x1c   : > { %s1877_s21 = scalar_select %p1583_p11, 1, 0 }
  0x1d   : > { %s1856_s23 = sshll.u32 %s1466_s12, 6  ;;  %s1855_s24 = sshll.u32 %s1588_s22, 2 }
  0x1e   : > { %1878 = sst [smem:[#allocation19_spill]] %s1877_s21  ;;  %p1592_p12 = pnand %p1217_p9, %p74_p5 }
  0x1f   : > { %s327_s26 = sand.u32 1, %s1466_s12   ;;  %s1880_s2 = sld [smem:[#allocation21_spill]] }
  0x20   : > { %s1879_s25 = scalar_select %p1592_p12, 1, 0 }
  0x21   : > { %s331_s14 = scalar_lea.vmem [#allocation5], %s1855_s24  ;;  %s1609_s17 = scalar_lea.sflag [#allocation6], %s327_s26 }
  0x22   : > { %s338_s16 = sshll.u32 %s331_s14, 4  ;;  %p1615_p1 = pneg %p1592_p12  ;;  %s1606_s16 = int_to_ptr.vmem [resolvable:$true] %s338_s16 }
  0x25   : > { %s1602_s29 = scalar_lea.hbm %s1880_s2, %s1856_s23  ;;  %s1279_s14 = scalar_lea.hbm %s1880_s2, 256 }
  0x26   : > { %s1274_s18 = scalar_lea.hbm %s1602_s29, 64  ;;  %p1280_p4 = scmp.lt.u32.totalorder %s1602_s29, %s1880_s2 }
  0x27   : > { %p1275_p0 = scmp.ne.s32.totalorder %s1602_s29, %s1274_s18  ;;  %p1281_p5 = scmp.lt.u32.totalorder %s1279_s14, %s1274_s18 }
  0x28   : > { %p1283_p8 = scmp.lt.u32.totalorder %s1274_s18, %s1602_s29 }
  0x29   : > { %p1277_p2 = pnand %p1615_p1, %p1275_p0  ;;  %p1282_p7 = por %p1281_p5, %p1280_p4 }
  0x2b   : > { %p1278_p3 = pneg %p1277_p2  ;;  %p1284_p9 = por %p1283_p8, %p1282_p7 }
  0x2d   : > { %p1285_p13 = pnand %p1284_p9, %p1278_p3 }
  0x2f   : > { %1288 = shalt.err (!%p1285_p13)
}
  0x30   : > { %s1289_s26 = scalar_lea.vmem %s1606_s16, 64  ;;  %s1468_s27 = smov [#allocation5]  }
  0x31   : > { %p1290_p0 = scmp.ne.s32.totalorder %s1606_s16, %s1289_s26  ;;  %s1294_s28 = sshll.u32 %s1468_s27, 4  ;;  %s1295_s28 = int_to_ptr.vmem [resolvable:$false] %s1294_s28 }
  0x32   : > { %s1296_s23 = scalar_lea.vmem %s1295_s28, 128  ;;  %p1297_p10 = scmp.lt.s32.totalorder %s1606_s16, %s1295_s28 }
  0x33   : > { %p1292_p2 = pnand %p1290_p0, %p1615_p1  ;;  %p1298_p6 = scmp.lt.s32.totalorder %s1296_s23, %s1289_s26 }
  0x35   : > { %p1293_p11 = pneg %p1292_p2  ;;  %p1299_p4 = por %p1298_p6, %p1297_p10 }
  0x37   : > { %p1300_p5 = pnand %p1299_p4, %p1293_p11 }
  0x39   : > { %1303 = shalt.err (!%p1300_p5)
}
  0x3a   : > { %1206 = dma.hbm_to_vmem [thread:$0]  (!%p1592_p12), %s1602_s29, 64, %s1606_s16, %s1609_s17  }
  0x3b   : > { %p360_p13 = scmp.lt.s32.totalorder %s1466_s12, 5  ;;  %s1882_s18 = sshll.u32 %s1466_s12, 6 }
  0x3c   : > { %s1883_s1 = sld [smem:[#allocation20_spill]]  ;;  %p1884_p6 = scmp.ge.s32.totalorder %s1466_s12, 1 }
  0x3d   : > { %s1886_s28 = sshll.u32 %s1588_s22, 2  ;;  %s310_s29 = scalar_lea.sflag [#allocation3], %s1588_s22 }
  0x3e   : > { %p1649_p10 = pnand %p1884_p6, %p360_p13  ;;  %s313_s23 = scalar_lea.vmem [#allocation2], %s1886_s28 }
  0x3f   : > { %s320_s2 = sshll.u32 %s313_s23, 4  ;;  %s321_s2 = int_to_ptr.vmem [resolvable:$true] %s320_s2 }
  0x40   : > { %s1885_s27 = scalar_select %p1649_p10, 1, 0 }
  0x42   : > { %s1645_s26 = scalar_lea.hbm %s1883_s1, %s1882_s18  ;;  %s1309_s14 = scalar_lea.hbm %s1883_s1, 256 }
  0x43   : > { %s1304_s16 = scalar_lea.hbm %s1645_s26, 64  ;;  %p1310_p8 = scmp.lt.u32.totalorder %s1645_s26, %s1883_s1 }
  0x44   : > { %p1305_p11 = scmp.ne.s32.totalorder %s1645_s26, %s1304_s16  ;;  %p1311_p9 = scmp.lt.u32.totalorder %s1309_s14, %s1304_s16 }
  0x45   : > { %p1313_p2 = scmp.lt.u32.totalorder %s1304_s16, %s1645_s26 }
  0x46   : > { %p1307_p3 = pnand %p1305_p11, %p1615_p1  ;;  %p1312_p0 = por %p1311_p9, %p1310_p8 }
  0x48   : > { %p1308_p7 = pneg %p1307_p3  ;;  %p1314_p4 = por %p1313_p2, %p1312_p0 }
  0x4a   : > { %p1315_p5 = pnand %p1314_p4, %p1308_p7 }
  0x4c   : > { %1318 = shalt.err (!%p1315_p5)
}
  0x4d   : > { %s1319_s28 = scalar_lea.vmem %s321_s2, 64  ;;  %s1469_s23 = smov [#allocation2]  }
  0x4e   : > { %p1320_p13 = scmp.ne.s32.totalorder %s321_s2, %s1319_s28  ;;  %s1324_s30 = sshll.u32 %s1469_s23, 4  ;;  %s1325_s30 = int_to_ptr.vmem [resolvable:$false] %s1324_s30 }
  0x4f   : > { %s1326_s18 = scalar_lea.vmem %s1325_s30, 128  ;;  %p1327_p3 = scmp.lt.s32.totalorder %s321_s2, %s1325_s30 }
  0x50   : > { %p1322_p6 = pnand %p1320_p13, %p1615_p1  ;;  %p1328_p10 = scmp.lt.s32.totalorder %s1326_s18, %s1319_s28 }
  0x52   : > { %p1323_p11 = pneg %p1322_p6  ;;  %p1329_p12 = por %p1328_p10, %p1327_p3 }
  0x54   : > { %p1330_p8 = pnand %p1329_p12, %p1323_p11 }
  0x56   : > { %1333 = shalt.err (!%p1330_p8)
}
  0x57   : > { %p1887_p9 = scmp.ne.s32.totalorder %s1879_s25, 0  ;;  %s1117_s15 = sshll.u32 %s1466_s12, 4 }
  0x58   : > { %s348_s21 = scalar_lea.vmem [#allocation7], %s1588_s22  ;;  %s353_s23 = scalar_lea.hbm %s1847_s3, %s1117_s15 }
  0x59   : > { %1203 = dma.hbm_to_vmem [thread:$0]  (!%p1887_p9), %s1645_s26, 64, %s321_s2, %s310_s29  }
  0x5a   : > { %s355_s16 = sshll.u32 %s348_s21, 4  ;;  %s1334_s30 = scalar_lea.hbm %s353_s23, 16  ;;  %s356_s16 = int_to_ptr.vmem [resolvable:$true] %s355_s16 }
  0x5b   : > { %p1335_p7 = scmp.ne.s32.totalorder %s353_s23, %s1334_s30  ;;  %s1339_s1 = scalar_lea.hbm %s1847_s3, 64 }
  0x5c   : > { %p1340_p0 = scmp.lt.u32.totalorder %s353_s23, %s1847_s3  ;;  %p1341_p2 = scmp.lt.u32.totalorder %s1339_s1, %s1334_s30 }
  0x5d   : > { %p1337_p12 = pnand %p1335_p7, %p1615_p1  ;;  %p1343_p5 = scmp.lt.u32.totalorder %s1334_s30, %s353_s23 }
  0x5e   : > { %p1342_p4 = por %p1341_p2, %p1340_p0 }
  0x5f   : > { %p1338_p10 = pneg %p1337_p12 }
  0x60   : > { %p1344_p13 = por %p1343_p5, %p1342_p4 }
  0x62   : > { %p1345_p6 = pnand %p1344_p13, %p1338_p10 }
  0x64   : > { %1348 = shalt.err (!%p1345_p6)
}
  0x65   : > { %s1349_s2 = scalar_lea.vmem %s356_s16, 16  ;;  %s1470_s22 = smov [#allocation7]  }
  0x66   : > { %p1350_p11 = scmp.ne.s32.totalorder %s356_s16, %s1349_s2  ;;  %s1354_s26 = sshll.u32 %s1470_s22, 4  ;;  %s1355_s26 = int_to_ptr.vmem [resolvable:$false] %s1354_s26 }
  0x67   : > { %s1356_s29 = scalar_lea.vmem %s1355_s26, 32  ;;  %p1357_p7 = scmp.lt.s32.totalorder %s356_s16, %s1355_s26 }
  0x68   : > { %p1352_p3 = pnand %p1350_p11, %p1615_p1  ;;  %p1358_p12 = scmp.lt.s32.totalorder %s1356_s29, %s1349_s2 }
  0x6a   : > { %p1353_p8 = pneg %p1352_p3  ;;  %p1359_p9 = por %p1358_p12, %p1357_p7 }
  0x6c   : > { %p1360_p0 = pnand %p1359_p9, %p1353_p8 }
  0x6e   : > { %1363 = shalt.err (!%p1360_p0)
}
  0x6f   : > { %p1888_p2 = scmp.ne.s32.totalorder %s1879_s25, 0  ;;  %p1889_p10 = scmp.ne.s32.totalorder %s1885_s27, 0 }
  0x70   : > { %s1694_s1 = sand.u32 (!%p1889_p10), 1, %s1458_s10   ;;  %p1890_p1 = scmp.ne.s32.totalorder (!%p1889_p10), %s1875_s19, 0 }
  0x71   : > { %1209 = dma.hbm_to_vmem [thread:$0]  (!%p1888_p2), %s353_s23, 16, %s356_s16, %s1609_s17  }
  0x72   : > { %364 = sbr.rel (%p1889_p10) target bundleno = 769 (0x301), region = 52  ;;  %s1697_s8 = sshll.u32 (!%p1889_p10), %s1694_s1, 2 }
  0x73   : > { %s367_s9 = scalar_lea.sflag (!%p1889_p10), [#allocation3], %s1694_s1  ;;  %s370_s11 = scalar_lea.vmem (!%p1889_p10), [#allocation2], %s1697_s8 }
  0x79   : > { %1437 = dma.done.wait (%p1890_p1), %s367_s9, 64  }
  0x7a   : > { %1439 = vsyncadd (%p1890_p1), %s367_s9, 4294967232  ;;  %s375_s25 = sand.u32 1, %s1555_s13   ;;  %s379_s27 = scalar_lea.vmem [#allocation5], %s1697_s8 }
  0x7b   : > { %s376_s17 = scalar_lea.sflag [#allocation6], %s375_s25 }
  0x7c   : > { %1441 = dma.done.wait (%p1890_p1), %s376_s17, 80  }
  0x7d   : > { %1443 = vsyncadd (%p1890_p1), %s376_s17, 4294967216  ;;  %p440_p9 = scmp.lt.s32.totalorder %s1555_s13, 3  ;;  %vm446_vm0 = vcmask 1042432   ;;  %v713_v5 = vld [vmem:[%s1848_s4] sm:$0xff]  ;;  %vm727_vm1 = vcmask 220160   ;;  %v1471_v9 = vmov 0  }
  0x7e   : > { %1163 = vmatprep.mubr.msk.f32.mxu0 %vm727_vm1, %v713_v5  ;;  %v715_v7 = vld [vmem:[%s1849_s5] sm:$0xff]  ;;  %1262 = vset.pattern.permute.xlu0 %v1471_v9  ;;  %v716_v11 = vld [vmem:[%s1849_s5 + $0x8] sm:$0xff]  ;;  %v1472_v27 = vmov 683565275   ;;  %v1473_v29 = vmov 2475754826  }
  0x7f   : > { %s441_s15 = scalar_select %p440_p9, %s1555_s13, 3  ;;  %1263 = vset.pattern.permute.xlu1 %v1471_v9  ;;  %719 = vperm.xlu0 %1262, %v715_v7   ;;  %v1474_v31 = vmov 2131351028   ;;  %v1475_v33 = vmov 2102212464  }
  0x80   : > { %v1476_v35 = vmov 920167782   ;;  %v1477_v42 = vmov 1326507024   ;;  %s432_s16 = scalar_lea.vmem [#allocation8], %s1697_s8  ;;  %s1891_s28 = sld [smem:[#allocation22_spill]] }
  0x81   : > { %s1123_s21 = sshll.u32 %s441_s15, 2  ;;  %s387_s15 = scalar_lea.vmem [#allocation7], %s1694_s1 }
  0x82   : > { %s443_s14 = scalar_lea.vmem %s1844_s0, %s1123_s21  ;;  %s1142_s21 = sshll.u32 %s1555_s13, 6 }
  0x83   : > { %v444_v0 = vld [vmem:[%s443_s14] sm:$0x7]  ;;  %724 = vperm.xlu0 %1262, %v716_v11   ;;  %s943_s24 = sshll.u32 %s432_s16, 4  ;;  %s439_s14 = scalar_lea.vmem [#allocation9], %s1697_s8  ;;  %s1774_s24 = int_to_ptr.vmem [resolvable:$true] %s943_s24 }
  0x84   : > { %v445_v1 = vmul.f32 %v444_v0, %v444_v0  ;;  %s956_s23 = sshll.u32 %s439_s14, 4  ;;  %s925_s8 = scalar_lea.sflag [#allocation4], %s1694_s1  ;;  %s1781_s23 = int_to_ptr.vmem [resolvable:$true] %s956_s23 }
  0x85   : > { %s1364_s22 = scalar_lea.vmem %s1774_s24, 64  ;;  %p1893_p5 = scmp.ne.s32.totalorder %s1876_s20, 0 }
  0x86   : > { %v447_v2 = vsel %vm446_vm0, %v445_v1, 0.0  ;;  %s1772_s18 = scalar_lea.hbm %s1891_s28, %s1142_s21  ;;  %p1365_p4 = scmp.ne.s32.totalorder %s1774_s24, %s1364_s22 }
  0x87   : > { %v448_v3 = vrot.slane %v447_v2, 4  ;;  %s1482_s26 = smov [#allocation8]  }
  0x88   : > { %p1366_p13 = pnand %p1365_p4, %p1893_p5  ;;  %s1368_s29 = sshll.u32 %s1482_s26, 4  ;;  %s1369_s29 = int_to_ptr.vmem [resolvable:$false] %s1368_s29 }
  0x89   : > { %v449_v4 = vadd.f32 %v448_v3, %v447_v2  ;;  %s1370_s9 = scalar_lea.vmem %s1369_s29, 128  ;;  %p1371_p11 = scmp.lt.s32.totalorder %s1774_s24, %s1369_s29 }
  0x8a   : > { %p1367_p6 = pneg %p1366_p13  ;;  %p1372_p3 = scmp.lt.s32.totalorder %s1370_s9, %s1364_s22 }
  0x8b   : > { %v450_v6 = vrot.slane %v449_v4, 2 }
  0x8c   : > { %p1373_p8 = por %p1372_p3, %p1371_p11 }
  0x8d   : > { %v451_v8 = vadd.f32 %v450_v6, %v449_v4 }
  0x8e   : > { %p1374_p7 = pnand %p1373_p8, %p1367_p6 }
  0x8f   : > { %v452_v10 = vrot.slane %v451_v8, 1 }
  0x91   : > { %v453_v12 = vadd.f32 %v452_v10, %v451_v8 }
  0x93   : > { %v454_v13 = vadd.f32 1e-20, %v453_v12 }
  0x95   : > { %1264 = vrsqrt.f32 %v454_v13 }
  0x9f   : > { %v1265_v14 = vpop.eup %1264 }
  0xa0   : > { %v1727_v15 = vmul.f32 %v1265_v14, %v444_v0 }
  0xa2   : > { %v460_v16 = vand.u32 2139095040, %v1727_v15  ;;  %v457_v18 = vand.u32 2147483647, %v1727_v15  ;;  %vm459_vm9 = vcmp.lt.s32.totalorder %v1727_v15, 0 }
  0xa4   : > { %v461_v17 = vshrl.u32 %v460_v16, 23  ;;  %v464_v21 = vand.u32 8388607, %v457_v18  ;;  %vm458_vm10 = vcmp.le.f32.partialorder %v457_v18, 0.7853982 }
  0xa6   : > { %v1124_v19 = vadd.s32 4294967169, %v461_v17  ;;  %v465_v24 = vor.u32 8388608, %v464_v21 }
  0xa8   : > { %v467_v20 = vadd.s32 1, %v1124_v19  ;;  %v505_v44 = vshll.u32 %v465_v24, 8 }
  0xaa   : > { %vm468_vm2 = vcmp.gt.s32.totalorder %v467_v20, 0 }
  0xab   : > { %v469_v22 = vsel %vm468_vm2, %v467_v20, 0 }
  0xac   : > { %v471_v23 = vand.u32 31, %v469_v22  ;;  %v470_v25 = vshrl.u32 %v469_v22, 5 }
  0xae   : > { %v472_v26 = vsub.s32 32, %v471_v23  ;;  %v474_v28 = vshll.u32 %v1472_v27, %v471_v23  ;;  %v477_v30 = vshll.u32 %v1473_v29, %v471_v23  ;;  %v480_v32 = vshll.u32 %v1474_v31, %v471_v23 }
  0xaf   : > { %v483_v34 = vshll.u32 %v1475_v33, %v471_v23  ;;  %v486_v36 = vshll.u32 %v1476_v35, %v471_v23  ;;  %vm489_vm3 = vcmp.lt.s32.totalorder %v470_v25, 1  ;;  %vm492_vm4 = vcmp.lt.s32.totalorder %v470_v25, 4 }
  0xb0   : > { %v473_v37 = vshrl.u32 %v1472_v27, %v472_v26  ;;  %v475_v38 = vshrl.u32 %v1473_v29, %v472_v26  ;;  %v478_v39 = vshrl.u32 %v1474_v31, %v472_v26  ;;  %v481_v40 = vshrl.u32 %v1475_v33, %v472_v26 }
  0xb1   : > { %v484_v41 = vshrl.u32 %v1476_v35, %v472_v26  ;;  %v487_v43 = vshrl.u32 %v1477_v42, %v472_v26  ;;  %vm490_vm5 = vcmp.lt.s32.totalorder %v470_v25, 2  ;;  %vm491_vm6 = vcmp.lt.s32.totalorder %v470_v25, 3 }
  0xb2   : > { %v476_v45 = vor.u32 %v475_v38, %v474_v28  ;;  %v479_v46 = vor.u32 %v478_v39, %v477_v30  ;;  %v482_v47 = vor.u32 %v481_v40, %v480_v32 }
  0xb3   : > { %v485_v48 = vor.u32 %v484_v41, %v483_v34  ;;  %v488_v49 = vor.u32 %v487_v43, %v486_v36 }
  0xb4   : > { %v493_v50 = vsel %vm489_vm3, %v473_v37, %v476_v45  ;;  %v494_v51 = vsel %vm492_vm4, %v482_v47, 2102212464  ;;  %v497_v52 = vsel %vm489_vm3, %v476_v45, %v479_v46  ;;  %v501_v53 = vsel %vm489_vm3, %v479_v46, %v482_v47 }
  0xb5   : > { %v495_v54 = vsel %vm491_vm6, %v479_v46, %v494_v51  ;;  %v498_v55 = vsel %vm492_vm4, %v485_v48, 920167782  ;;  %v502_v56 = vsel %vm492_vm4, %v488_v49, 1326507024  ;;  %vm549_vm3 = vweird.f32 %v1727_v15 }
  0xb6   : > { %v499_v57 = vsel %vm491_vm6, %v482_v47, %v498_v55  ;;  %v503_v58 = vsel %vm491_vm6, %v485_v48, %v502_v56  ;;  %v496_v59 = vsel %vm490_vm5, %v493_v50, %v495_v54  ;;  %vm701_vm4 = vcmask 1045504  }
  0xb7   : > { %v500_v60 = vsel %vm490_vm5, %v497_v52, %v499_v57  ;;  %v504_v61 = vsel %vm490_vm5, %v501_v53, %v503_v58  ;;  %v512_v2 = vmul.u32 %v505_v44, %v496_v59  ;;  %vm703_vm5 = vcmask 1040384  }
  0xb8   : > { %v1733_v62 = vmul.u32.u64.low %v505_v44, %v504_v61  ;;  %v1734_v63 = vmul.u32.u64.high %v505_v44, %v504_v61, %v1733_v62  ;;  %v1736_v0 = vmul.u32.u64.low %v505_v44, %v500_v60  ;;  %v1737_v1 = vmul.u32.u64.high %v505_v44, %v500_v60, %v1736_v0 }
  0xb9   : > { %vm705_vm6 = vcmask 1043456  }
  0xba   : > { %vm514_vm7 = vc.u32 %v1734_v63, %v1736_v0  ;;  %v515_v3 = vadd.s32 1, %v1737_v1  ;;  %v513_v14 = vadd.s32 %v1736_v0, %v1734_v63 }
  0xbc   : > { %v516_v4 = vsel %vm514_vm7, %v515_v3, %v1737_v1  ;;  %vm707_vm7 = vcmask 1046528  }
  0xbd   : > { %v517_v5 = vadd.s32 %v516_v4, %v512_v2 }
  0xbf   : > { %v518_v6 = vadd.s32 536870912, %v517_v5 }
  0xc1   : > { %v519_v7 = vshrl.u32 %v518_v6, 30 }
  0xc3   : > { %v520_v8 = vshll.u32 %v519_v7, 30  ;;  %v543_v28 = vsub.s32 4, %v519_v7 }
  0xc5   : > { %v521_v9 = vsub.s32 %v517_v5, %v520_v8  ;;  %v544_v31 = vsel %vm459_vm9, %v543_v28, %v519_v7 }
  0xc6   : > { %v546_v34 = vsel %vm458_vm10, 0, %v544_v31 }
  0xc7   : > { %v523_v10 = vsub.s32 0, %v521_v9  ;;  %v550_v35 = vadd.s32 3, %v546_v34  ;;  %v654_v37 = vand.u32 3, %v546_v34 }
  0xc9   : > { %v1125_v11 = vmin.u32 %v523_v10, %v521_v9  ;;  %v551_v36 = vand.u32 3, %v550_v35  ;;  %vm659_vm12 = vcmp.eq.s32.totalorder %v654_v37, 2  ;;  %vm656_vm14 = vcmp.eq.s32.totalorder %v654_v37, 0 }
  0xca   : > { %vm655_vm2 = vcmp.lt.s32.totalorder %v654_v37, 2 }
  0xcb   : > { %v525_v12 = vclz %v1125_v11  ;;  %vm556_vm11 = vcmp.eq.s32.totalorder %v551_v36, 2  ;;  %vm553_vm13 = vcmp.eq.s32.totalorder %v551_v36, 0  ;;  %vm552_vm15 = vcmp.lt.s32.totalorder %v551_v36, 2 }
  0xcc   : > { %v904_v36 = vlaneseq }
  0xcd   : > { %v1126_v13 = vadd.s32 4294967294, %v525_v12 }
  0xcf   : > { %vm1127_vm8 = vcmp.lt.s32.totalorder %v1126_v13, 0 }
  0xd0   : > { %v528_v16 = vsel %vm1127_vm8, 0, %v1126_v13  ;;  %vm709_vm8 = vcmask 1041408  }
  0xd1   : > { %v529_v17 = vsub.s32 32, %v528_v16  ;;  %v530_v19 = vshll.u32 %v521_v9, %v528_v16  ;;  %v533_v20 = vsub.s32 4294967266, %v528_v16  ;;  %v714_v16 = vld [vmem:[%s1848_s4 + $0x8] sm:$0xff] }
  0xd3   : > { %v531_v21 = vshrl.u32 %v513_v14, %v529_v17  ;;  %v534_v22 = vadd.s32 127, %v533_v20  ;;  %v1479_v17 = vmov 0.0|0.0   ;;  %v815_v20 = vld [vmem:[%s1851_s7] sm:$0x7] }
  0xd4   : > { %1183 = vmatprep.subr.bf16.mxu1 %v1479_v17  ;;  %818 = vperm.xlu1 %1263, %v815_v20  }
  0xd5   : > { %v532_v23 = vor.u32 %v531_v21, %v530_v19  ;;  %v535_v24 = vshll.u32 %v534_v22, 23  ;;  %v1481_v19 = vmov 0.0  }
  0xd7   : > { %v536_v25 = vor.u32 4788187, %v535_v24  ;;  %v539_v26 = vcvt.s32.f32 %v532_v23 }
  0xd9   : > { %v537_v27 = vand.u32 2147483647, %v536_v25 }
  0xdb   : > { %v540_v29 = vmul.f32 %v539_v26, %v537_v27 }
  0xdd   : > { %v541_v30 = vxor.u32 2147483648, %v540_v29 }
  0xdf   : > { %v542_v32 = vsel %vm459_vm9, %v541_v30, %v540_v29  ;;  %vm711_vm9 = vcmask 1044480   ;;  %v814_v30 = vld [vmem:[%s1850_s6] sm:$0x7] }
  0xe0   : > { %v545_v33 = vsel %vm458_vm10, %v1727_v15, %v542_v32  ;;  %vm1478_vm10 = vmmov 1  }
  0xe1   : > { %1266 = vcosq.f32 %v545_v33 }
  0xe2   : > { %1268 = vsinq.f32 %v545_v33 }
  0xeb   : > { %v1267_v38 = vpop.eup %1266 }
  0xec   : > { %v1269_v39 = vpop.eup %1268  ;;  %v557_v40 = vxor.u32 2147483648, %v1267_v38 }
  0xed   : > { %v554_v18 = vxor.u32 2147483648, %v1269_v39 }
  0xee   : > { %v558_v41 = vsel %vm556_vm11, %v557_v40, %v1269_v39  ;;  %v661_v42 = vsel %vm659_vm12, %v557_v40, %v1269_v39  ;;  %vm1178_vm11 = vmpackc.low %vm446_vm0, %vm1478_vm10  ;;  %vm1480_vm12 = vmmov 0   ;;  %v901_v40 = vld [vmem:[%s387_s15] sm:$0x1] }
  0xef   : > { %v555_v43 = vsel %vm553_vm13, %v1267_v38, %v554_v18  ;;  %v658_v44 = vsel %vm656_vm14, %v1267_v38, %v554_v18  ;;  %1170 = vmatprep.mubr.msk.f32.mxu1 %vm1480_vm12, %v1481_v19  ;;  %v905_v38 = vshrl.u32 %v904_v36, 7 }
  0xf0   : > { %v559_v45 = vsel %vm552_vm15, %v555_v43, %v558_v41  ;;  %v662_v46 = vsel %vm655_vm2, %v658_v44, %v661_v42  ;;  %v902_v41 = vsub.f32 1.0, %v901_v40  ;;  %v910_v43 = vld [vmem:[%s370_s11] sm:$0x7]  ;;  %v920_v44 = vld [vmem:[%s379_s27] sm:$0x7]  ;;  %s1892_s27 = sld [smem:[#allocation23_spill]] }
  0xf1   : > { %v560_v47 = vsel %vm549_vm3, nan, %v559_v45  ;;  %v663_v48 = vsel %vm549_vm3, nan, %v662_v46  ;;  %v906_v18 = vsub.s32 0, %v905_v38 }
  0xf2   : > { %v664_v49 = vmul.f32 2.0, %v560_v47  ;;  %v666_v50 = vmul.f32 2.0, %v663_v48  ;;  %v680_v51 = vrot.slane %v560_v47, 5  ;;  %v683_v54 = vrot.slane %v663_v48, 2 }
  0xf3   : > { %v915_v42 = vrot.slane %v901_v40, %v906_v18  ;;  %v907_v45 = vrot.slane %v902_v41, %v906_v18 }
  0xf4   : > { %v665_v52 = vmul.f32 %v664_v49, %v663_v48  ;;  %v667_v53 = vmul.f32 %v666_v50, %v663_v48  ;;  %v700_v58 = vsel %vm446_vm0, %v1727_v15, %v680_v51  ;;  %vm821_vm0 = vcmask 130048  }
  0xf5   : > { %v702_v63 = vsel %vm701_vm4, %v700_v58, %v683_v54  ;;  %v917_v46 = vmul.f32 %v915_v42, %v910_v43  ;;  %v921_v47 = vmul.f32 %v920_v44, %v915_v42 }
  0xf6   : > { %v1132_v55 = vadd.f32 -1.0, %v667_v53  ;;  %v669_v56 = vmul.f32 2.0, %v665_v52  ;;  %v686_v57 = vrot.slane %v665_v52, 7  ;;  %s1779_s2 = scalar_lea.hbm %s1892_s27, %s1142_s21 }
  0xf8   : > { %v670_v59 = vmul.f32 %v1132_v55, %v669_v56  ;;  %v671_v60 = vmul.f32 2.0, %v1132_v55  ;;  %v689_v61 = vrot.slane %v1132_v55, 4  ;;  %v704_v62 = vsel %vm703_vm5, %v683_v54, %v686_v57 }
  0xfa   : > { %v672_v0 = vmul.f32 %v1132_v55, %v671_v60  ;;  %v674_v1 = vmul.f32 2.0, %v670_v59  ;;  %v692_v2 = vrot.slane %v670_v59, 1  ;;  %v706_v3 = vsel %vm705_vm6, %v704_v62, %v689_v61 }
  0xfc   : > { %v1133_v4 = vadd.f32 -1.0, %v672_v0  ;;  %v708_v5 = vsel %vm707_vm7, %v706_v3, %v692_v2 }
  0xfd   : > { %v1173_v6 = vpack.c.bf16 %v708_v5, %v702_v63 }
  0xfe   : > { %v675_v7 = vmul.f32 %v1133_v4, %v674_v1  ;;  %v676_v8 = vmul.f32 2.0, %v1133_v4  ;;  %v695_v9 = vrot.slane %v1133_v4, 6  ;;  %v720_v21 = vpop.permute.xlu0 %719 }
  0xff   : > { %1174 = vmatprep.subr.bf16.mxu0 %v1173_v6 }
 0x100   : > { %1176 = vmatpush3.bf16.msra.mxu0 %v1173_v6  ;;  %v677_v15 = vmul.f32 %v1133_v4, %v676_v8  ;;  %v698_v10 = vrot.slane %v675_v7, 3  ;;  %v710_v11 = vsel %vm709_vm8, %v692_v2, %v695_v9 }
 0x102   : > { %v1134_v12 = vadd.f32 -1.0, %v677_v15  ;;  %v712_v13 = vsel %vm711_vm9, %v710_v11, %v698_v10  ;;  %v725_v22 = vpop.permute.xlu0 %724 }
 0x104   : > { %v1177_v14 = vpack.c.bf16 %v1134_v12, %v712_v13 }
 0x106   : > { %1179 = vmatprep.subr.msk.bf16.mxu0 %vm1178_vm11, %v1177_v14 }
 0x107   : > { %1182 = vmatpush3.bf16.msk.msra.mxu0 %vm1178_vm11, %v1177_v14 }
 0x10a   : > { %1164 = vmatmul.mubr.msk.f32.vlgmr.msra.gmra.mrb[0].mxu0 %vm727_vm1, %v714_v16 }
 0x153   : > { %v819_v31 = vpop.permute.xlu1 %818 }
 0x1dd   : > { %v1165_v23 = vpop.f32.mrb[0].mxu0 }
 0x1de   : > { %v809_v24 = vadd.f32 %v1165_v23, %v725_v22  ;;  %v803_v25 = vpop.f32.mrb[1].mxu0 }
 0x1df   : > { %v804_v26 = vadd.f32 %v803_v25, %v720_v21 }
 0x1e0   : > { %v813_v27 = vmax.f32 %v809_v24, 0.0 }
 0x1e1   : > { %v812_v28 = vmax.f32 %v804_v26, 0.0 }
 0x1e3   : > { %v1184_v29 = vpack.c.bf16 %v813_v27, %v812_v28 }
 0x1e5   : > { %1185 = vmatpush3.bf16.msra.mxu1 %v1184_v29 }
 0x1e8   : > { %1171 = vmatmul.mubr.msk.f32.vlgmr.msra.gmra.mrb[0].mxu1 %vm821_vm0, %v814_v30 }
 0x2bb   : > { %v891_v32 = vpop.f32.mrb[0].mxu1 }
 0x2bc   : > { %v892_v33 = vadd.f32 %v891_v32, %v819_v31  ;;  %v1172_v34 = vpop.f32.mrb[1].mxu1 }
 0x2be   : > { %v1139_v35 = vmul.f32 -1.442695, %v892_v33 }
 0x2c0   : > { %1270 = vpow2.f32 %v1139_v35 }
 0x2ca   : > { %v1271_v37 = vpop.eup %1270 }
 0x2cb   : > { %v898_v39 = vadd.f32 1.0, %v1271_v37 }
 0x2cd   : > { %1272 = vrcp.f32 %v898_v39 }
 0x2d7   : > { %v1273_v48 = vpop.eup %1272 }
 0x2d8   : > { %v909_v49 = vmul.f32 %v1273_v48, %v907_v45 }
 0x2da   : > { %v918_v50 = vadd.f32 %v917_v46, %v909_v49  ;;  %v922_v51 = vadd.f32 %v921_v47, %v909_v49 }
 0x2dc   : > { %919 = vst [vmem:[%s432_s16] sm:$0x7] %v918_v50  ;;  %923 = vst [vmem:[%s439_s14] sm:$0x7] %v922_v51 }
 0x2dd   : > { %1377 = shalt.err (!%p1374_p7)
}
 0x2de   : > { %s1378_s25 = scalar_lea.hbm %s1772_s18, 64  ;;  %s1382_s21 = scalar_lea.hbm %s1891_s28, 256 }
 0x2df   : > { %p1379_p12 = scmp.ne.s32.totalorder %s1772_s18, %s1378_s25  ;;  %p1383_p10 = scmp.lt.u32.totalorder %s1772_s18, %s1891_s28 }
 0x2e0   : > { %p1384_p1 = scmp.lt.u32.totalorder %s1382_s21, %s1378_s25  ;;  %p1386_p4 = scmp.lt.u32.totalorder %s1378_s25, %s1772_s18 }
 0x2e1   : > { %p1380_p0 = pnand %p1379_p12, %p1893_p5 }
 0x2e2   : > { %p1385_p9 = por %p1384_p1, %p1383_p10 }
 0x2e3   : > { %p1381_p2 = pneg %p1380_p0 }
 0x2e4   : > { %p1387_p13 = por %p1386_p4, %p1385_p9 }
 0x2e6   : > { %p1388_p6 = pnand %p1387_p13, %p1381_p2 }
 0x2e8   : > { %1391 = shalt.err (!%p1388_p6)
}
 0x2e9   : > { %1196 = dma.vmem_to_hbm [thread:$0]  (%p1893_p5), %s1774_s24, 64, %s1772_s18, %s925_s8  }
 0x2ea   : > { %s930_s30 = scalar_lea.sflag [#allocation10], %s1694_s1  ;;  %s1392_s19 = scalar_lea.vmem %s1781_s23, 64 }
 0x2eb   : > { %p1393_p11 = scmp.ne.s32.totalorder %s1781_s23, %s1392_s19  ;;  %s1483_s13 = smov [#allocation9]  }
 0x2ec   : > { %s1396_s11 = sshll.u32 %s1483_s13, 4  ;;  %s1397_s11 = int_to_ptr.vmem [resolvable:$false] %s1396_s11 }
 0x2ed   : > { %p1394_p3 = pnand %p1393_p11, %p1893_p5  ;;  %s1398_s22 = scalar_lea.vmem %s1397_s11, 128 }
 0x2ee   : > { %p1399_p7 = scmp.lt.s32.totalorder %s1781_s23, %s1397_s11  ;;  %p1400_p12 = scmp.lt.s32.totalorder %s1398_s22, %s1392_s19 }
 0x2ef   : > { %p1395_p8 = pneg %p1394_p3 }
 0x2f0   : > { %p1401_p0 = por %p1400_p12, %p1399_p7 }
 0x2f2   : > { %p1402_p2 = pnand %p1401_p0, %p1395_p8 }
 0x2f4   : > { %1405 = shalt.err (!%p1402_p2)
}
 0x2f5   : > { %s1406_s1 = scalar_lea.hbm %s1779_s2, 64  ;;  %s1410_s8 = scalar_lea.hbm %s1892_s27, 256 }
 0x2f6   : > { %p1407_p10 = scmp.ne.s32.totalorder %s1779_s2, %s1406_s1  ;;  %p1411_p4 = scmp.lt.u32.totalorder %s1779_s2, %s1892_s27 }
 0x2f7   : > { %p1412_p13 = scmp.lt.u32.totalorder %s1410_s8, %s1406_s1  ;;  %p1414_p11 = scmp.lt.u32.totalorder %s1406_s1, %s1779_s2 }
 0x2f8   : > { %p1408_p1 = pnand %p1407_p10, %p1893_p5 }
 0x2f9   : > { %p1413_p6 = por %p1412_p13, %p1411_p4 }
 0x2fa   : > { %p1409_p9 = pneg %p1408_p1 }
 0x2fb   : > { %p1415_p3 = por %p1414_p11, %p1413_p6 }
 0x2fd   : > { %p1416_p8 = pnand %p1415_p3, %p1409_p9 }
 0x2ff   : > { %1419 = shalt.err (!%p1416_p8)
}
 0x300   : > { %1197 = dma.vmem_to_hbm [thread:$0]  (%p1893_p5), %s1781_s23, 64, %s1779_s2, %s930_s30  }
 0x301 PF: > { %s1894_s9 = sld [smem:[#allocation15_spill]]  ;;  %s1895_s25 = sld [smem:[#allocation19_spill]] }
 0x302   : > { %p1218_p7 = scmp.ge.s32.totalorder %s1466_s12, 2 }
 0x307   : > { %s968_s17 = sand.u32 1, %s1894_s9   ;;  %p1896_p12 = scmp.ne.s32.totalorder %s1895_s25, 0 }
 0x308   : > { %s969_s15 = scalar_lea.sflag [#allocation4], %s968_s17 }
 0x309   : > { %p1211_p0 = pnand %p1218_p7, %p1896_p12 }
 0x30b   : > { %1445 = dma.done.wait (!%p1211_p0), %s969_s15, 64  }
 0x30c   : > { %1447 = vsyncadd (!%p1211_p0), %s969_s15, 4294967232  ;;  %s978_s21 = scalar_lea.sflag [#allocation10], %s968_s17 }
 0x30d   : > { %1449 = dma.done.wait (!%p1211_p0), %s978_s21, 64  }
 0x30e   : > { %1451 = vsyncadd (!%p1211_p0), %s978_s21, 4294967232  ;;  %s1897_s12 = sld [smem:[#allocation17_spill]]  ;;  %s1898_s20 = sld [smem:[#allocation16_spill]] }
 0x30f   : > { %s1899_s11 = sld [smem:[#allocation18_spill]]  ;;  %s1900_s30 = smov %s1458_s10 }
 0x314   : > { %p29_p5 = scmp.ge.s32.totalorder %s1897_s12, 6   ;;  %s1901_s10 = smov %s1898_s20 }
 0x316   :  { %31 = sbr.rel (!%p29_p5) target bundleno = 14 (0xe), region = 141 }
 0x31d   :  { %983 = vsyncpa [#allocation3], 1 }
 0x31e   :  { %985 = vsyncpa [#allocation3 + $0x1], 1 }
 0x31f   :  { %986 = vsyncpa [#allocation6], 1 }
 0x320   :  { %988 = vsyncpa [#allocation6 + $0x1], 1 }
 0x321   :  { %989 = vsyncpa [#allocation4], 1 }
 0x322   :  { %991 = vsyncpa [#allocation4 + $0x1], 1 }
 0x323   :  { %992 = vsyncpa [#allocation10], 1 }
 0x324   :  { %994 = vsyncpa [#allocation10 + $0x1], 1 }

</bundles_post_ra>
